<compile_context>
chip_gen: v7x
topology: tpu7x:2x2x1
jax: 0.10.0
libtpu: 0.0.40
codegen_flags: <defaults>
</compile_context>

<pallas_src>
import math

import jax
import jax.numpy as jnp
from jax.experimental import pallas as pl
from jax.experimental.pallas import tpu as pltpu

INPUT_DIM = 6
Z_DIM = 3

# Row offsets inside the packed [32, B] kernel output.  Each group starts on an
# 8-sublane tile boundary so every store is a clean single-tile store.
_RECON_OFF, _MU_OFF, _LOGVAR_OFF, _CLF_OFF = 0, 8, 16, 24
_OUT_ROWS = 32

# Row offsets inside the fused fc31|fc32 output (mu / logvar) and the fused
# fc6|fc9 output (recon-logits / clf) -- also 8-sublane aligned.
_ML_MU_OFF, _ML_LV_OFF = 0, 8          # inside the [16, B] "ml" activation
_Y_RECON_OFF, _Y_CLF_OFF = 0, 8        # inside the [16, B] "y" activation


def _vae_kernel(
    x_ref, eps_ref,
    w1_ref, b1_ref, w2_ref, b2_ref, w3_ref, b3_ref,
    w47_ref, b47_ref, w58_ref, b58_ref, w69_ref, b69_ref,
    out_ref,
):
    """Fused VAE forward on a (features, batch) lane-dense tile."""

    def linear(w_ref, h, b_ref):
        # W: [out, in], h: [in, bb], b: [out, 1] -> [out, bb]
        return jnp.dot(w_ref[...], h, preferred_element_type=jnp.float32) + b_ref[...]

    def relu(v):
        return jnp.maximum(v, 0.0)

    x = x_ref[...]                                         # [6,  bb]

    # ---- encoder ----
    h1 = relu(linear(w1_ref, x, b1_ref))                   # [32, bb]
    h2 = relu(linear(w2_ref, h1, b2_ref))                  # [16, bb]
    ml = linear(w3_ref, h2, b3_ref)                        # [16, bb] fused fc31|fc32
    mu = ml[_ML_MU_OFF:_ML_MU_OFF + Z_DIM, :]              # [3,  bb]
    logvar = ml[_ML_LV_OFF:_ML_LV_OFF + Z_DIM, :]          # [3,  bb]

    # ---- reparameterize ----
    z = mu + eps_ref[...] * jnp.exp(0.5 * logvar)          # [3,  bb]

    # ---- decoder + classifier (fused: row-concat then block-diagonal) ----
    h47 = relu(linear(w47_ref, z, b47_ref))                # [48, bb] rows 0:16 dec, 16:48 clf
    h58 = relu(linear(w58_ref, h47, b58_ref))              # [48, bb] rows 0:32 dec, 32:48 clf
    y = linear(w69_ref, h58, b69_ref)                      # [16, bb] rows 0:6 recon-logit, 8:14 clf

    out_ref[_RECON_OFF:_RECON_OFF + INPUT_DIM, :] = jax.nn.sigmoid(
        y[_Y_RECON_OFF:_Y_RECON_OFF + INPUT_DIM, :])
    out_ref[_MU_OFF:_MU_OFF + Z_DIM, :] = mu
    out_ref[_LOGVAR_OFF:_LOGVAR_OFF + Z_DIM, :] = logvar
    out_ref[_CLF_OFF:_CLF_OFF + INPUT_DIM, :] = y[_Y_CLF_OFF:_Y_CLF_OFF + INPUT_DIM, :]


# ----------------------------------------------------------------------------
# Parameters (PyTorch convention: W is [out, in], b is [out]).
# ----------------------------------------------------------------------------
_LAYER_DIMS = {
    "fc1": (INPUT_DIM, 32), "fc2": (32, 16),
    "fc31": (16, Z_DIM), "fc32": (16, Z_DIM),
    "fc4": (Z_DIM, 16), "fc5": (16, 32), "fc6": (32, INPUT_DIM),
    "fc7": (Z_DIM, 32), "fc8": (32, 16), "fc9": (16, 6),
}


def init_vae_params(key):
    """PyTorch-style init: U(-1/sqrt(fan_in), 1/sqrt(fan_in))."""
    params = {}
    for name, (fan_in, fan_out) in _LAYER_DIMS.items():
        key, kw, kb = jax.random.split(key, 3)
        bound = 1.0 / math.sqrt(fan_in)
        w = jax.random.uniform(kw, (fan_out, fan_in), jnp.float32, -bound, bound)
        b = jax.random.uniform(kb, (fan_out,), jnp.float32, -bound, bound)
        params[name] = (w, b)
    return params


def _pack_params(params):
    """Fuse the 10 Linear layers into 6 (weight, bias) pairs for the kernel."""
    def wb(name):
        w, b = params[name]
        return w.astype(jnp.float32), b.astype(jnp.float32)

    w1, b1 = wb("fc1")
    w2, b2 = wb("fc2")
    w31, b31 = wb("fc31")
    w32, b32 = wb("fc32")
    w4, b4 = wb("fc4")
    w5, b5 = wb("fc5")
    w6, b6 = wb("fc6")
    w7, b7 = wb("fc7")
    w8, b8 = wb("fc8")
    w9, b9 = wb("fc9")

    # fc31 | fc32 share h2: stack along output rows (8-sublane aligned groups).
    w3 = (jnp.zeros((16, 16), jnp.float32)
          .at[_ML_MU_OFF:_ML_MU_OFF + Z_DIM, :].set(w31)
          .at[_ML_LV_OFF:_ML_LV_OFF + Z_DIM, :].set(w32))
    b3 = (jnp.zeros((16,), jnp.float32)
          .at[_ML_MU_OFF:_ML_MU_OFF + Z_DIM].set(b31)
          .at[_ML_LV_OFF:_ML_LV_OFF + Z_DIM].set(b32))

    # fc4 | fc7 both consume z: row-concatenate.
    w47 = jnp.concatenate([w4, w7], axis=0)                      # [48, 3]
    b47 = jnp.concatenate([b4, b7], axis=0)                      # [48]

    # fc5 / fc8 act on disjoint row ranges of h47: block diagonal.
    w58 = (jnp.zeros((48, 48), jnp.float32)
           .at[0:32, 0:16].set(w5)
           .at[32:48, 16:48].set(w8))                            # [48, 48]
    b58 = jnp.concatenate([b5, b8], axis=0)                      # [48]

    # fc6 / fc9 act on disjoint row ranges of h58: block diagonal, 8-aligned rows.
    w69 = (jnp.zeros((16, 48), jnp.float32)
           .at[_Y_RECON_OFF:_Y_RECON_OFF + INPUT_DIM, 0:32].set(w6)
           .at[_Y_CLF_OFF:_Y_CLF_OFF + INPUT_DIM, 32:48].set(w9))  # [16, 48]
    b69 = (jnp.zeros((16,), jnp.float32)
           .at[_Y_RECON_OFF:_Y_RECON_OFF + INPUT_DIM].set(b6)
           .at[_Y_CLF_OFF:_Y_CLF_OFF + INPUT_DIM].set(b9))

    flat = []
    for w, b in zip([w1, w2, w3, w47, w58, w69],
                    [b1, b2, b3, b47, b58, b69]):
        flat += [w, b.reshape(-1, 1)]
    return flat


# ----------------------------------------------------------------------------
# Wrapper
# ----------------------------------------------------------------------------
def vae_forward(x, eps, params, *, block_b=512):
    """x: [B, 6] float32, eps: [B, 3] float32 (reparameterization noise)."""
    B = x.shape[0]
    assert x.shape == (B, INPUT_DIM)
    assert eps.shape == (B, Z_DIM)

    flat_params = _pack_params(params)

    # Batch on the lane axis (lane-dense compute/stores).
    xT = x.T.astype(jnp.float32)          # [6, B]
    epsT = eps.T.astype(jnp.float32)      # [3, B]

    # Lane-axis blocks must be multiples of 128; pad batch to a full grid.
    b128 = ((B + 127) // 128) * 128
    bb = max(128, (min(block_b, b128) // 128) * 128)
    Bp = ((B + bb - 1) // bb) * bb
    pad = Bp - B
    if pad:
        xT = jnp.pad(xT, ((0, 0), (0, pad)))
        epsT = jnp.pad(epsT, ((0, 0), (0, pad)))

    grid = (Bp // bb,)

    in_specs = [
        pl.BlockSpec((INPUT_DIM, bb), lambda i: (0, i)),
        pl.BlockSpec((Z_DIM, bb), lambda i: (0, i)),
    ]
    # Tiny weights/biases: whole-array blocks with a constant index_map
    # (resident across grid steps, no re-fetch between consecutive steps).
    for p in flat_params:
        in_specs.append(pl.BlockSpec(p.shape, lambda i: (0, 0)))

    out_spec = pl.BlockSpec((_OUT_ROWS, bb), lambda i: (0, i))
    out_shape = jax.ShapeDtypeStruct((_OUT_ROWS, Bp), jnp.float32)

    n_weight_macs = sum(int(p.size) for p in flat_params[0::2])
    cost = pl.CostEstimate(
        flops=2 * n_weight_macs * Bp,
        transcendentals=(Z_DIM + INPUT_DIM) * Bp,      # exp + sigmoid
        bytes_accessed=4 * ((INPUT_DIM + Z_DIM + _OUT_ROWS) * Bp
                            + sum(int(p.size) for p in flat_params)),
    )

    out = pl.pallas_call(
        _vae_kernel,
        grid=grid,
        in_specs=in_specs,
        out_specs=out_spec,
        out_shape=out_shape,
        compiler_params=pltpu.CompilerParams(
            dimension_semantics=("parallel",),
        ),
        cost_estimate=cost,
    )(xT, epsT, *flat_params)

    recon = out[_RECON_OFF:_RECON_OFF + INPUT_DIM, :B].T
    mu = out[_MU_OFF:_MU_OFF + Z_DIM, :B].T
    logvar = out[_LOGVAR_OFF:_LOGVAR_OFF + Z_DIM, :B].T
    clf = out[_CLF_OFF:_CLF_OFF + INPUT_DIM, :B].T
    return recon, mu, logvar, clf


def vae_forward_ref(x, eps, params):
    """Pure-JAX reference (PyTorch layer convention) for correctness check."""
    def lin(h, name):
        w, b = params[name]
        return h @ w.T + b

    h1 = jax.nn.relu(lin(x, "fc1"))
    h2 = jax.nn.relu(lin(h1, "fc2"))
    mu = lin(h2, "fc31")
    logvar = lin(h2, "fc32")
    z = mu + eps * jnp.exp(0.5 * logvar)
    h4 = jax.nn.relu(lin(z, "fc4"))
    h5 = jax.nn.relu(lin(h4, "fc5"))
    recon = jax.nn.sigmoid(lin(h5, "fc6"))
    h6 = jax.nn.relu(lin(z, "fc7"))
    h7 = jax.nn.relu(lin(h6, "fc8"))
    clf = lin(h7, "fc9")
    return recon, mu, logvar, clf


if __name__ == "__main__":
    key = jax.random.PRNGKey(0)
    kp, kx, ke = jax.random.split(key, 3)

    params = init_vae_params(kp)

    # B deliberately not a multiple of 128: exercises batch padding, and with
    # block_b=128 gives a 2-step parallel grid (both v7x TensorCores usable).
    B = 200
    x = jax.random.normal(kx, (B, INPUT_DIM), jnp.float32)
    # eps corresponds to torch.randn_like(std), supplied explicitly so the
    # forward pass is deterministic.
    eps = jax.random.normal(ke, (B, Z_DIM), jnp.float32)

    recon, mu, logvar, clf = vae_forward(x, eps, params, block_b=128)
    jax.block_until_ready((recon, mu, logvar, clf))

    # Correctness check against pure-JAX reference.
    r_ref, mu_r, lv_r, clf_r = vae_forward_ref(x, eps, params)
    assert jnp.allclose(recon, r_ref, atol=1e-5), "recon mismatch"
    assert jnp.allclose(mu, mu_r, atol=1e-5), "mu mismatch"
    assert jnp.allclose(logvar, lv_r, atol=1e-5), "logvar mismatch"
    assert jnp.allclose(clf, clf_r, atol=1e-5), "clf mismatch"

    print("KERNEL_OK")
</pallas_src>

<mosaic_0001>
module attributes {stable_mosaic.version = 11 : i64} {
  func.func @_vae_kernel(%arg0: i32, %arg1: memref<6x128xf32, #tpu.memory_space<vmem>>, %arg2: memref<3x128xf32, #tpu.memory_space<vmem>>, %arg3: memref<32x6xf32, #tpu.memory_space<vmem>>, %arg4: memref<32x1xf32, #tpu.memory_space<vmem>>, %arg5: memref<16x32xf32, #tpu.memory_space<vmem>>, %arg6: memref<16x1xf32, #tpu.memory_space<vmem>>, %arg7: memref<16x16xf32, #tpu.memory_space<vmem>>, %arg8: memref<16x1xf32, #tpu.memory_space<vmem>>, %arg9: memref<48x3xf32, #tpu.memory_space<vmem>>, %arg10: memref<48x1xf32, #tpu.memory_space<vmem>>, %arg11: memref<48x48xf32, #tpu.memory_space<vmem>>, %arg12: memref<48x1xf32, #tpu.memory_space<vmem>>, %arg13: memref<16x48xf32, #tpu.memory_space<vmem>>, %arg14: memref<16x1xf32, #tpu.memory_space<vmem>>, %arg15: memref<32x128xf32, #tpu.memory_space<vmem>>) attributes {dimension_semantics = [#tpu.dimension_semantics<parallel>], iteration_bounds = array<i64: 2>, scalar_prefetch = 0 : i64, scratch_operands = 0 : i64, tpu.core_type = #tpu.core_type<tc>, window_params = [{transform_indices = @transform_0, window_bounds = array<i64: 6, 128>}, {transform_indices = @transform_1, window_bounds = array<i64: 3, 128>}, {pipeline_mode = #tpu.pipeline_mode<synchronous>, transform_indices = @transform_2, window_bounds = array<i64: 32, 6>}, {pipeline_mode = #tpu.pipeline_mode<synchronous>, transform_indices = @transform_3, window_bounds = array<i64: 32, 1>}, {pipeline_mode = #tpu.pipeline_mode<synchronous>, transform_indices = @transform_4, window_bounds = array<i64: 16, 32>}, {pipeline_mode = #tpu.pipeline_mode<synchronous>, transform_indices = @transform_5, window_bounds = array<i64: 16, 1>}, {pipeline_mode = #tpu.pipeline_mode<synchronous>, transform_indices = @transform_6, window_bounds = array<i64: 16, 16>}, {pipeline_mode = #tpu.pipeline_mode<synchronous>, transform_indices = @transform_7, window_bounds = array<i64: 16, 1>}, {pipeline_mode = #tpu.pipeline_mode<synchronous>, transform_indices = @transform_8, window_bounds = array<i64: 48, 3>}, {pipeline_mode = #tpu.pipeline_mode<synchronous>, transform_indices = @transform_9, window_bounds = array<i64: 48, 1>}, {pipeline_mode = #tpu.pipeline_mode<synchronous>, transform_indices = @transform_10, window_bounds = array<i64: 48, 48>}, {pipeline_mode = #tpu.pipeline_mode<synchronous>, transform_indices = @transform_11, window_bounds = array<i64: 48, 1>}, {pipeline_mode = #tpu.pipeline_mode<synchronous>, transform_indices = @transform_12, window_bounds = array<i64: 16, 48>}, {pipeline_mode = #tpu.pipeline_mode<synchronous>, transform_indices = @transform_13, window_bounds = array<i64: 16, 1>}, {transform_indices = @transform_14, window_bounds = array<i64: 32, 128>}]} {
    %c0 = arith.constant 0 : index
    %c0_0 = arith.constant 0 : index
    %0 = vector.load %arg1[%c0, %c0_0] : memref<6x128xf32, #tpu.memory_space<vmem>>, vector<6x128xf32>
    %c0_1 = arith.constant 0 : index
    %c0_2 = arith.constant 0 : index
    %1 = vector.load %arg3[%c0_1, %c0_2] : memref<32x6xf32, #tpu.memory_space<vmem>>, vector<32x6xf32>
    %cst = arith.constant dense<0.000000e+00> : vector<32x128xf32>
    %2 = tpu.matmul %1, %0, %cst {dimension_numbers = #tpu.dot_dimension_numbers<[1], [0], [0], [1], [0, 0, 1, 1], [], []>} : vector<32x6xf32>, vector<6x128xf32>, vector<32x128xf32> -> vector<32x128xf32>
    %c0_3 = arith.constant 0 : index
    %c0_4 = arith.constant 0 : index
    %3 = vector.load %arg4[%c0_3, %c0_4] : memref<32x1xf32, #tpu.memory_space<vmem>>, vector<32x1xf32>
    %4 = vector.broadcast %3 : vector<32x1xf32> to vector<32x128xf32>
    %5 = arith.addf %2, %4 : vector<32x128xf32>
    %cst_5 = arith.constant 0.000000e+00 : f32
    %6 = vector.broadcast %cst_5 : f32 to vector<32x128xf32>
    %7 = arith.maximumf %5, %6 : vector<32x128xf32>
    %c0_6 = arith.constant 0 : index
    %c0_7 = arith.constant 0 : index
    %8 = vector.load %arg5[%c0_6, %c0_7] : memref<16x32xf32, #tpu.memory_space<vmem>>, vector<16x32xf32>
    %cst_8 = arith.constant dense<0.000000e+00> : vector<16x128xf32>
    %9 = tpu.matmul %8, %7, %cst_8 {dimension_numbers = #tpu.dot_dimension_numbers<[1], [0], [0], [1], [0, 0, 1, 1], [], []>} : vector<16x32xf32>, vector<32x128xf32>, vector<16x128xf32> -> vector<16x128xf32>
    %c0_9 = arith.constant 0 : index
    %c0_10 = arith.constant 0 : index
    %10 = vector.load %arg6[%c0_9, %c0_10] : memref<16x1xf32, #tpu.memory_space<vmem>>, vector<16x1xf32>
    %11 = vector.broadcast %10 : vector<16x1xf32> to vector<16x128xf32>
    %12 = arith.addf %9, %11 : vector<16x128xf32>
    %cst_11 = arith.constant 0.000000e+00 : f32
    %13 = vector.broadcast %cst_11 : f32 to vector<16x128xf32>
    %14 = arith.maximumf %12, %13 : vector<16x128xf32>
    %c0_12 = arith.constant 0 : index
    %c0_13 = arith.constant 0 : index
    %15 = vector.load %arg7[%c0_12, %c0_13] : memref<16x16xf32, #tpu.memory_space<vmem>>, vector<16x16xf32>
    %cst_14 = arith.constant dense<0.000000e+00> : vector<16x128xf32>
    %16 = tpu.matmul %15, %14, %cst_14 {dimension_numbers = #tpu.dot_dimension_numbers<[1], [0], [0], [1], [0, 0, 1, 1], [], []>} : vector<16x16xf32>, vector<16x128xf32>, vector<16x128xf32> -> vector<16x128xf32>
    %c0_15 = arith.constant 0 : index
    %c0_16 = arith.constant 0 : index
    %17 = vector.load %arg8[%c0_15, %c0_16] : memref<16x1xf32, #tpu.memory_space<vmem>>, vector<16x1xf32>
    %18 = vector.broadcast %17 : vector<16x1xf32> to vector<16x128xf32>
    %19 = arith.addf %16, %18 : vector<16x128xf32>
    %20 = vector.extract_strided_slice %19 {offsets = [0, 0], sizes = [3, 128], strides = [1, 1]} : vector<16x128xf32> to vector<3x128xf32>
    %21 = vector.extract_strided_slice %19 {offsets = [8, 0], sizes = [3, 128], strides = [1, 1]} : vector<16x128xf32> to vector<3x128xf32>
    %c0_17 = arith.constant 0 : index
    %c0_18 = arith.constant 0 : index
    %22 = vector.load %arg2[%c0_17, %c0_18] : memref<3x128xf32, #tpu.memory_space<vmem>>, vector<3x128xf32>
    %cst_19 = arith.constant 5.000000e-01 : f32
    %23 = vector.broadcast %cst_19 : f32 to vector<3x128xf32>
    %24 = arith.mulf %23, %21 : vector<3x128xf32>
    %25 = math.exp %24 : vector<3x128xf32>
    %26 = arith.mulf %22, %25 : vector<3x128xf32>
    %27 = arith.addf %20, %26 : vector<3x128xf32>
    %c0_20 = arith.constant 0 : index
    %c0_21 = arith.constant 0 : index
    %28 = vector.load %arg9[%c0_20, %c0_21] : memref<48x3xf32, #tpu.memory_space<vmem>>, vector<48x3xf32>
    %cst_22 = arith.constant dense<0.000000e+00> : vector<48x128xf32>
    %29 = tpu.matmul %28, %27, %cst_22 {dimension_numbers = #tpu.dot_dimension_numbers<[1], [0], [0], [1], [0, 0, 1, 1], [], []>} : vector<48x3xf32>, vector<3x128xf32>, vector<48x128xf32> -> vector<48x128xf32>
    %c0_23 = arith.constant 0 : index
    %c0_24 = arith.constant 0 : index
    %30 = vector.load %arg10[%c0_23, %c0_24] : memref<48x1xf32, #tpu.memory_space<vmem>>, vector<48x1xf32>
    %31 = vector.broadcast %30 : vector<48x1xf32> to vector<48x128xf32>
    %32 = arith.addf %29, %31 : vector<48x128xf32>
    %cst_25 = arith.constant 0.000000e+00 : f32
    %33 = vector.broadcast %cst_25 : f32 to vector<48x128xf32>
    %34 = arith.maximumf %32, %33 : vector<48x128xf32>
    %c0_26 = arith.constant 0 : index
    %c0_27 = arith.constant 0 : index
    %35 = vector.load %arg11[%c0_26, %c0_27] : memref<48x48xf32, #tpu.memory_space<vmem>>, vector<48x48xf32>
    %cst_28 = arith.constant dense<0.000000e+00> : vector<48x128xf32>
    %36 = tpu.matmul %35, %34, %cst_28 {dimension_numbers = #tpu.dot_dimension_numbers<[1], [0], [0], [1], [0, 0, 1, 1], [], []>} : vector<48x48xf32>, vector<48x128xf32>, vector<48x128xf32> -> vector<48x128xf32>
    %c0_29 = arith.constant 0 : index
    %c0_30 = arith.constant 0 : index
    %37 = vector.load %arg12[%c0_29, %c0_30] : memref<48x1xf32, #tpu.memory_space<vmem>>, vector<48x1xf32>
    %38 = vector.broadcast %37 : vector<48x1xf32> to vector<48x128xf32>
    %39 = arith.addf %36, %38 : vector<48x128xf32>
    %cst_31 = arith.constant 0.000000e+00 : f32
    %40 = vector.broadcast %cst_31 : f32 to vector<48x128xf32>
    %41 = arith.maximumf %39, %40 : vector<48x128xf32>
    %c0_32 = arith.constant 0 : index
    %c0_33 = arith.constant 0 : index
    %42 = vector.load %arg13[%c0_32, %c0_33] : memref<16x48xf32, #tpu.memory_space<vmem>>, vector<16x48xf32>
    %cst_34 = arith.constant dense<0.000000e+00> : vector<16x128xf32>
    %43 = tpu.matmul %42, %41, %cst_34 {dimension_numbers = #tpu.dot_dimension_numbers<[1], [0], [0], [1], [0, 0, 1, 1], [], []>} : vector<16x48xf32>, vector<48x128xf32>, vector<16x128xf32> -> vector<16x128xf32>
    %c0_35 = arith.constant 0 : index
    %c0_36 = arith.constant 0 : index
    %44 = vector.load %arg14[%c0_35, %c0_36] : memref<16x1xf32, #tpu.memory_space<vmem>>, vector<16x1xf32>
    %45 = vector.broadcast %44 : vector<16x1xf32> to vector<16x128xf32>
    %46 = arith.addf %43, %45 : vector<16x128xf32>
    %47 = vector.extract_strided_slice %46 {offsets = [0, 0], sizes = [6, 128], strides = [1, 1]} : vector<16x128xf32> to vector<6x128xf32>
    %48 = arith.negf %47 : vector<6x128xf32>
    %49 = math.exp %48 : vector<6x128xf32>
    %cst_37 = arith.constant 1.000000e+00 : f32
    %50 = vector.broadcast %cst_37 : f32 to vector<6x128xf32>
    %51 = arith.addf %50, %49 : vector<6x128xf32>
    %52 = arith.divf %50, %51 : vector<6x128xf32>
    %c0_38 = arith.constant 0 : index
    %c0_39 = arith.constant 0 : index
    %53 = vector.load %arg15[%c0_38, %c0_39] : memref<32x128xf32, #tpu.memory_space<vmem>>, vector<6x128xf32>
    tpu.vector_store %arg15[%c0_38, %c0_39], %52 {strides = array<i32>} : memref<32x128xf32, #tpu.memory_space<vmem>>, vector<6x128xf32>,
    %c8 = arith.constant 8 : index
    %c0_40 = arith.constant 0 : index
    %54 = vector.load %arg15[%c8, %c0_40] : memref<32x128xf32, #tpu.memory_space<vmem>>, vector<3x128xf32>
    tpu.vector_store %arg15[%c8, %c0_40], %20 {strides = array<i32>} : memref<32x128xf32, #tpu.memory_space<vmem>>, vector<3x128xf32>,
    %c16 = arith.constant 16 : index
    %c0_41 = arith.constant 0 : index
    %55 = vector.load %arg15[%c16, %c0_41] : memref<32x128xf32, #tpu.memory_space<vmem>>, vector<3x128xf32>
    tpu.vector_store %arg15[%c16, %c0_41], %21 {strides = array<i32>} : memref<32x128xf32, #tpu.memory_space<vmem>>, vector<3x128xf32>,
    %56 = vector.extract_strided_slice %46 {offsets = [8, 0], sizes = [6, 128], strides = [1, 1]} : vector<16x128xf32> to vector<6x128xf32>
    %c24 = arith.constant 24 : index
    %c0_42 = arith.constant 0 : index
    %57 = vector.load %arg15[%c24, %c0_42] : memref<32x128xf32, #tpu.memory_space<vmem>>, vector<6x128xf32>
    tpu.vector_store %arg15[%c24, %c0_42], %56 {strides = array<i32>} : memref<32x128xf32, #tpu.memory_space<vmem>>, vector<6x128xf32>,
    return
  }
  func.func @transform_0(%arg0: i32) -> (i32, i32) {
    %c0_i32 = arith.constant 0 : i32
    %c0_i32_0 = arith.constant 0 : i32
    return %c0_i32, %arg0 : i32, i32
  }
  func.func @transform_1(%arg0: i32) -> (i32, i32) {
    %c0_i32 = arith.constant 0 : i32
    %c0_i32_0 = arith.constant 0 : i32
    return %c0_i32, %arg0 : i32, i32
  }
  func.func @transform_2(%arg0: i32) -> (i32, i32) {
    %c0_i32 = arith.constant 0 : i32
    %c0_i32_0 = arith.constant 0 : i32
    %c0_i32_1 = arith.constant 0 : i32
    return %c0_i32, %c0_i32_0 : i32, i32
  }
  func.func @transform_3(%arg0: i32) -> (i32, i32) {
    %c0_i32 = arith.constant 0 : i32
    %c0_i32_0 = arith.constant 0 : i32
    %c0_i32_1 = arith.constant 0 : i32
    return %c0_i32, %c0_i32_0 : i32, i32
  }
  func.func @transform_4(%arg0: i32) -> (i32, i32) {
    %c0_i32 = arith.constant 0 : i32
    %c0_i32_0 = arith.constant 0 : i32
    %c0_i32_1 = arith.constant 0 : i32
    return %c0_i32, %c0_i32_0 : i32, i32
  }
  func.func @transform_5(%arg0: i32) -> (i32, i32) {
    %c0_i32 = arith.constant 0 : i32
    %c0_i32_0 = arith.constant 0 : i32
    %c0_i32_1 = arith.constant 0 : i32
    return %c0_i32, %c0_i32_0 : i32, i32
  }
  func.func @transform_6(%arg0: i32) -> (i32, i32) {
    %c0_i32 = arith.constant 0 : i32
    %c0_i32_0 = arith.constant 0 : i32
    %c0_i32_1 = arith.constant 0 : i32
    return %c0_i32, %c0_i32_0 : i32, i32
  }
  func.func @transform_7(%arg0: i32) -> (i32, i32) {
    %c0_i32 = arith.constant 0 : i32
    %c0_i32_0 = arith.constant 0 : i32
    %c0_i32_1 = arith.constant 0 : i32
    return %c0_i32, %c0_i32_0 : i32, i32
  }
  func.func @transform_8(%arg0: i32) -> (i32, i32) {
    %c0_i32 = arith.constant 0 : i32
    %c0_i32_0 = arith.constant 0 : i32
    %c0_i32_1 = arith.constant 0 : i32
    return %c0_i32, %c0_i32_0 : i32, i32
  }
  func.func @transform_9(%arg0: i32) -> (i32, i32) {
    %c0_i32 = arith.constant 0 : i32
    %c0_i32_0 = arith.constant 0 : i32
    %c0_i32_1 = arith.constant 0 : i32
    return %c0_i32, %c0_i32_0 : i32, i32
  }
  func.func @transform_10(%arg0: i32) -> (i32, i32) {
    %c0_i32 = arith.constant 0 : i32
    %c0_i32_0 = arith.constant 0 : i32
    %c0_i32_1 = arith.constant 0 : i32
    return %c0_i32, %c0_i32_0 : i32, i32
  }
  func.func @transform_11(%arg0: i32) -> (i32, i32) {
    %c0_i32 = arith.constant 0 : i32
    %c0_i32_0 = arith.constant 0 : i32
    %c0_i32_1 = arith.constant 0 : i32
    return %c0_i32, %c0_i32_0 : i32, i32
  }
  func.func @transform_12(%arg0: i32) -> (i32, i32) {
    %c0_i32 = arith.constant 0 : i32
    %c0_i32_0 = arith.constant 0 : i32
    %c0_i32_1 = arith.constant 0 : i32
    return %c0_i32, %c0_i32_0 : i32, i32
  }
  func.func @transform_13(%arg0: i32) -> (i32, i32) {
    %c0_i32 = arith.constant 0 : i32
    %c0_i32_0 = arith.constant 0 : i32
    %c0_i32_1 = arith.constant 0 : i32
    return %c0_i32, %c0_i32_0 : i32, i32
  }
  func.func @transform_14(%arg0: i32) -> (i32, i32) {
    %c0_i32 = arith.constant 0 : i32
    %c0_i32_0 = arith.constant 0 : i32
    return %c0_i32, %arg0 : i32, i32
  }
}

</mosaic_0001>

<bundles_post_ra>
// kernel: tpu_custom_call.1
= control target key start
LH: loop header
LB: loop body
LE: loop exit
PB: predicated region body
PF: predicated region fallthrough
CT: control target
= control target key end

     0   :  { %19 = vsyncpa [#allocation3], 0  ;;  %s1990_s0 = inlined_call_operand.vmem [shape: f32[6,256], index: 0, kind: input, shape index: {}]   ;;  %s1991_s1 = inlined_call_operand.vmem [shape: f32[3,256], index: 1, kind: input, shape index: {}]   ;;  %s1992_s2 = inlined_call_operand.vmem [shape: f32[32,6], index: 2, kind: input, shape index: {}]   ;;  %s1993_s3 = inlined_call_operand.vmem [shape: f32[32,1], index: 3, kind: input, shape index: {}]   ;;  %s1994_s4 = inlined_call_operand.vmem [shape: f32[16,32], index: 4, kind: input, shape index: {}]   ;;  %s1995_s5 = inlined_call_operand.vmem [shape: f32[16,1], index: 5, kind: input, shape index: {}]   ;;  %s1996_s6 = inlined_call_operand.vmem [shape: f32[16,16], index: 6, kind: input, shape index: {}]   ;;  %s1997_s7 = inlined_call_operand.vmem [shape: f32[16,1], index: 7, kind: input, shape index: {}]   ;;  %s1998_s8 = inlined_call_operand.vmem [shape: f32[48,3], index: 8, kind: input, shape index: {}]   ;;  %s1999_s9 = inlined_call_operand.vmem [shape: f32[48,1], index: 9, kind: input, shape index: {}]   ;;  %s2000_s10 = inlined_call_operand.vmem [shape: f32[48,48], index: 10, kind: input, shape index: {}]   ;;  %s2001_s11 = inlined_call_operand.vmem [shape: f32[48,1], index: 11, kind: input, shape index: {}]   ;;  %s2002_s12 = inlined_call_operand.vmem [shape: f32[16,48], index: 12, kind: input, shape index: {}]   ;;  %s2003_s13 = inlined_call_operand.vmem [shape: f32[16,1], index: 13, kind: input, shape index: {}]   ;;  %s2004_s14 = inlined_call_operand.hbm [shape: f32[32,256], index: 14, kind: output, shape index: {}]  }
   0x1   :  { %21 = vsyncpa [#allocation3 + $0x1], 0  ;;  %s1717_s29 = smov 0   ;;  %s1719_s30 = smov 0  }
   0x2   :  { %s1721_s15 = smov 0   ;;  %s1723_s16 = smov 0  }
   0x3 LB: > { %2011 = sst [smem:[#allocation5_spill]] %s1623_s29  ;;  %s1738_s17 = sadd.s32 4294967295, %s1635_s16   ;;  %s1635_s16 = sphi %s1723_s16, %s2022_s16   ;;  %s1631_s15 = sphi %s1721_s15, %s2024_s15   ;;  %s1627_s30 = sphi %s1719_s30, %s2026_s30   ;;  %s1623_s29 = sphi %s1717_s29, %s2025_s29  }
   0x4   : > { %2012 = sst [smem:[#allocation6_spill]] %s1631_s15  ;;  %s1335_s18 = sadd.s32 4294967294, %s1635_s16  }
   0x5   : > { %2013 = sst [smem:[#allocation7_spill]] %s1635_s16  ;;  %s1742_s19 = sadd.s32 1, %s1635_s16  }
   0x6   : > { %2014 = sst [smem:[#allocation8_spill]] %s1742_s19  ;;  %s338_s20 = sadd.s32 1, %s1631_s15 }
   0x7   : > { %s335_s21 = ssub.s32 %s1635_s16, %s1742_s19  ;;  %p348_p0 = scmp.ne.s32.totalorder %s1631_s15, %s1627_s30 }
   0x8   : > { %p336_p1 = scmp.eq.s32.totalorder %s335_s21, 0  ;;  %p349_p2 = scmp.eq.s32.totalorder %s1738_s17, 1 }
   0x9   : > { %p354_p3 = scmp.ne.s32.totalorder %s1627_s30, %s1623_s29  ;;  %p355_p4 = scmp.eq.s32.totalorder %s1335_s18, 1 }
   0xa   : > { %s1753_s22 = scalar_select %p336_p1, %s1631_s15, %s338_s20  }
   0xb   : > { %p1755_p5 = por %p349_p2, %p348_p0  ;;  %p1759_p6 = por %p355_p4, %p354_p3 }
   0xc   : > { %2015 = sst [smem:[#allocation9_spill]] %s1753_s22  ;;  %p1338_p7 = scmp.ge.s32.totalorder %s1635_s16, 1 }
   0xd   : > { %s2017_s24 = scalar_select %p1759_p6, 1, 0 }
   0xe   : > { %p423_p8 = scmp.lt.s32.totalorder %s1635_s16, 3 }
   0xf   : > { %2018 = sst [smem:[#allocation10_spill]] %s2017_s24 }
  0x10   : > { %p424_p9 = pnand %p1338_p7, %p423_p8 }
  0x11   : > { %p472_p10 = scmp.lt.s32.totalorder (!%p424_p9), %s1738_s17, 1  ;;  %v481_v0 = vld [vmem:[%s1992_s2] sm:$0xff] (!%p424_p9)  ;;  %vm509_vm0 = vcmask (!%p424_p9), 48128   ;;  %v487_v2 = vld [vmem:[%s1993_s3 + $0x10] sm:$0xff] (!%p424_p9)  ;;  %v1637_v3 = vmov (!%p424_p9), 0   ;;  %vm522_vm1 = vcmask (!%p424_p9), 1045504  }
  0x12   : > { %427 = sbr.rel (%p424_p9) target bundleno = 1436 (0x59c), region = 76  ;;  %1415 = vmatprep.mubr.msk.f32.mxu1 (!%p424_p9), %vm509_vm0, %v481_v0  ;;  %v485_v1 = vld [vmem:[%s1993_s3] sm:$0xff] (!%p424_p9)  ;;  %1565 = vset.pattern.permute.xlu0 (!%p424_p9), %v1637_v3  ;;  %v486_v4 = vld [vmem:[%s1993_s3 + $0x8] sm:$0xff] (!%p424_p9)  ;;  %v488_v5 = vld [vmem:[%s1993_s3 + $0x18] sm:$0xff] (!%p424_p9)  ;;  %vm629_vm2 = vcmask (!%p424_p9), 261120   ;;  %vm727_vm3 = vcmask (!%p424_p9), 130048  }
  0x13   : > { %1566 = vset.pattern.permute.xlu1 (!%p424_p9), %v1637_v3  ;;  %491 = vperm.xlu0 (!%p424_p9), %1565, %v485_v1   ;;  %v482_v7 = vld [vmem:[%s1992_s2 + $0x8] sm:$0xff] (!%p424_p9)  ;;  %v483_v8 = vld [vmem:[%s1992_s2 + $0x10] sm:$0xff] (!%p424_p9)  ;;  %v617_v9 = vld [vmem:[%s1995_s5] sm:$0xff] (!%p424_p9)  ;;  %vm857_vm4 = vcmask (!%p424_p9), 23552   ;;  %s469_s22 = sand.u32 (!%p424_p9), 1, %s1627_s30   ;;  %vm876_vm5 = vcmask (!%p424_p9), 1042432  }
  0x14   : > { %501 = vperm.xlu1 (!%p424_p9), %1566, %v487_v2   ;;  %v618_v10 = vld [vmem:[%s1995_s5 + $0x8] sm:$0xff] (!%p424_p9)  ;;  %v484_v11 = vld [vmem:[%s1992_s2 + $0x18] sm:$0xff] (!%p424_p9)  ;;  %v715_v13 = vld [vmem:[%s1997_s7] sm:$0xff] (!%p424_p9)  ;;  %s1339_s26 = sshll.u32 (!%p424_p9), %s469_s22, 5  ;;  %vm1023_vm6 = vcmask (!%p424_p9), 392192   ;;  %s1368_s20 = sshll.u32 (!%p424_p9), %s1738_s17, 7 }
  0x15   : > { %v716_v12 = vld [vmem:[%s1997_s7 + $0x8] sm:$0xff] (!%p424_p9)  ;;  %v821_v14 = vld [vmem:[%s1999_s9] sm:$0xff] (!%p424_p9)  ;;  %v823_v16 = vld [vmem:[%s1999_s9 + $0x10] sm:$0xff] (!%p424_p9)  ;;  %s1944_s19 = scalar_lea.hbm (!%p424_p9), %s2004_s14, %s1368_s20  ;;  %s1949_s24 = scalar_lea.sflag (!%p424_p9), [#allocation3], %s469_s22 }
  0x16   : > { %v822_v15 = vld [vmem:[%s1999_s9 + $0x8] sm:$0xff] (!%p424_p9)  ;;  %v824_v17 = vld [vmem:[%s1999_s9 + $0x18] sm:$0xff] (!%p424_p9)  ;;  %v825_v18 = vld [vmem:[%s1999_s9 + $0x20] sm:$0xff] (!%p424_p9) }
  0x17   : > { %496 = vperm.xlu0 (!%p424_p9), %1565, %v486_v4   ;;  %v826_v19 = vld [vmem:[%s1999_s9 + $0x28] sm:$0xff] (!%p424_p9)  ;;  %v987_v20 = vld [vmem:[%s2001_s11] sm:$0xff] (!%p424_p9)  ;;  %v989_v22 = vld [vmem:[%s2001_s11 + $0x10] sm:$0xff] (!%p424_p9) }
  0x18   : > { %506 = vperm.xlu1 (!%p424_p9), %1566, %v488_v5   ;;  %v988_v21 = vld [vmem:[%s2001_s11 + $0x8] sm:$0xff] (!%p424_p9)  ;;  %v990_v23 = vld [vmem:[%s2001_s11 + $0x18] sm:$0xff] (!%p424_p9)  ;;  %v991_v24 = vld [vmem:[%s2001_s11 + $0x20] sm:$0xff] (!%p424_p9) }
  0x19   : > { %s1777_s21 = scalar_select %p472_p10, %s1738_s17, 1  ;;  %v992_v25 = vld [vmem:[%s2001_s11 + $0x28] sm:$0xff]  ;;  %v1145_v26 = vld [vmem:[%s2003_s13] sm:$0xff] }
  0x1a   : > { %v1146_v27 = vld [vmem:[%s2003_s13 + $0x8] sm:$0xff]  ;;  %v615_v28 = vld [vmem:[%s1994_s4] sm:$0xff]  ;;  %s1638_s17 = smov [#allocation2]  }
  0x1b   : > { %s1340_s25 = sshll.u32 %s1777_s21, 3  ;;  %621 = vperm.xlu0 %1565, %v617_v9   ;;  %v616_v47 = vld [vmem:[%s1994_s4 + $0x8] sm:$0xff]  ;;  %v713_v48 = vld [vmem:[%s1996_s6] sm:$0xff]  ;;  %v817_v9 = vld [vmem:[%s1998_s8 + $0x10] sm:$0xff]  ;;  %s1577_s16 = sshll.u32 %s1638_s17, 4  ;;  %s1578_s16 = int_to_ptr.vmem [resolvable:$false] %s1577_s16 }
  0x1c   : > { %s475_s15 = scalar_lea.vmem %s1990_s0, %s1340_s25  ;;  %626 = vperm.xlu1 %1566, %v618_v10   ;;  %1436 = vmatprep.mubr.msk.f32.mxu0 %vm727_vm3, %v713_v48  ;;  %v714_v58 = vld [vmem:[%s1996_s6 + $0x8] sm:$0xff]  ;;  %v815_v59 = vld [vmem:[%s1998_s8] sm:$0xff]  ;;  %s1876_s25 = scalar_lea.vmem [#allocation2], %s1339_s26  ;;  %v818_v10 = vld [vmem:[%s1998_s8 + $0x18] sm:$0xff] }
  0x1d   : > { %v480_v6 = vld [vmem:[%s475_s15] sm:$0x3f]  ;;  %s1341_s15 = sshll.u32 %s1777_s21, 2  ;;  %s1261_s21 = sshll.u32 %s1876_s25, 4  ;;  %s1939_s21 = int_to_ptr.vmem [resolvable:$true] %s1261_s21 }
  0x1e   : > { %1413 = vmatprep.subr.msk.mxu1 %vm522_vm1, %v480_v6  ;;  %s479_s29 = scalar_lea.vmem %s1991_s1, %s1341_s15  ;;  %s1579_s27 = scalar_lea.vmem %s1578_s16, 1024 }
  0x1f   : > { %1414 = vmatpush3.msk.msra.mxu1 %vm522_vm1, %v480_v6  ;;  %724 = vperm.xlu0 %1565, %v716_v12   ;;  %v809_v4 = vld [vmem:[%s479_s29] sm:$0x7]  ;;  %v820_v12 = vld [vmem:[%s1998_s8 + $0x28] sm:$0xff]  ;;  %s1573_s29 = scalar_lea.vmem %s1939_s21, 512  ;;  %p1580_p0 = scmp.lt.s32.totalorder %s1939_s21, %s1578_s16 }
  0x20   : > { %1416 = vmatmul.mubr.msk.f32.vlgmr.msra.gmra.mrb[0].mxu1 %vm509_vm0, %v482_v7  ;;  %719 = vperm.xlu1 %1566, %v715_v13   ;;  %v981_v13 = vld [vmem:[%s2000_s10] sm:$0xff]  ;;  %p1574_p11 = scmp.ne.s32.totalorder %s1939_s21, %s1573_s29  ;;  %p1581_p1 = scmp.lt.s32.totalorder %s1579_s27, %s1573_s29 }
  0x21   : > { %1418 = vmatprep.mubr.msk.f32.mxu1 %vm509_vm0, %v483_v8  ;;  %v816_v8 = vld [vmem:[%s1998_s8 + $0x8] sm:$0xff] }
  0x22   : > { %p1575_p12 = pnand %p1574_p11, %p1755_p5  ;;  %p1582_p2 = por %p1581_p1, %p1580_p0 }
  0x23   : > { %829 = vperm.xlu0 %1565, %v821_v14  }
  0x24   : > { %1419 = vmatmul.mubr.msk.f32.gmra.mrb[2].mxu1 %vm509_vm0, %v484_v11  ;;  %834 = vperm.xlu1 %1566, %v822_v15   ;;  %v819_v11 = vld [vmem:[%s1998_s8 + $0x20] sm:$0xff]  ;;  %p1576_p13 = pneg %p1575_p12 }
  0x25   : > { %1429 = vmatprep.mubr.msk.f32.mxu1 %vm629_vm2, %v615_v28 }
  0x26   : > { %p1583_p3 = pnand %p1582_p2, %p1576_p13 }
  0x27   : > { %839 = vperm.xlu0 %1565, %v823_v16  }
  0x28   : > { %844 = vperm.xlu1 %1566, %v824_v17  }
  0x2b   : > { %849 = vperm.xlu0 %1565, %v825_v18  }
  0x2c   : > { %854 = vperm.xlu1 %1566, %v826_v19  }
  0x2f   : > { %995 = vperm.xlu0 %1565, %v987_v20  }
  0x30   : > { %1000 = vperm.xlu1 %1566, %v988_v21  }
  0x33   : > { %1005 = vperm.xlu0 %1565, %v989_v22  }
  0x34   : > { %1010 = vperm.xlu1 %1566, %v990_v23  }
  0x37   : > { %1015 = vperm.xlu0 %1565, %v991_v24  }
  0x38   : > { %1020 = vperm.xlu1 %1566, %v992_v25  }
  0x3b   : > { %1149 = vperm.xlu0 %1565, %v1145_v26  }
  0x3c   : > { %1154 = vperm.xlu1 %1566, %v1146_v27  }
  0x92   : > { %v492_v29 = vpop.permute.xlu0 %491 }
  0x93   : > { %v502_v30 = vpop.permute.xlu1 %501 }
  0x96   : > { %v497_v31 = vpop.permute.xlu0 %496 }
  0x97   : > { %v507_v37 = vpop.permute.xlu1 %506 }
  0x9a   : > { %v622_v51 = vpop.permute.xlu0 %621 }
  0x9b   : > { %v627_v49 = vpop.permute.xlu1 %626 }
  0x9e   : > { %v725_v60 = vpop.permute.xlu0 %724 }
  0x9f   : > { %v720_v62 = vpop.permute.xlu1 %719 }
  0xa2   : > { %v830_v15 = vpop.permute.xlu0 %829 }
  0xa3   : > { %v835_v14 = vpop.permute.xlu1 %834 }
  0xa6   : > { %v840_v21 = vpop.permute.xlu0 %839 }
  0xa7   : > { %v845_v19 = vpop.permute.xlu1 %844 }
  0xf3   : > { %v1417_v32 = vpop.f32.mrb[0].mxu1 }
  0xf4   : > { %v598_v33 = vadd.f32 %v1417_v32, %v497_v31  ;;  %v592_v34 = vpop.f32.mrb[1].mxu1 }
  0xf5   : > { %v593_v35 = vadd.f32 %v592_v34, %v492_v29 }
  0xf6   : > { %v612_v36 = vmax.f32 %v598_v33, 0.0  ;;  %v850_v33 = vpop.permute.xlu0 %849 }
  0xf7   : > { %v611_v38 = vmax.f32 %v593_v35, 0.0  ;;  %v1420_v39 = vpop.f32.mrb[2].mxu1 }
  0xf8   : > { %v608_v40 = vadd.f32 %v1420_v39, %v507_v37  ;;  %v602_v41 = vpop.f32.mrb[3].mxu1 }
  0xf9   : > { %v1486_v42 = vpack.c.bf16 %v612_v36, %v611_v38  ;;  %v603_v43 = vadd.f32 %v602_v41, %v502_v30  ;;  %v855_v30 = vpop.permute.xlu1 %854  ;;  %v982_v41 = vld [vmem:[%s2000_s10 + $0x8] sm:$0xff] }
  0xfa   : > { %v614_v44 = vmax.f32 %v608_v40, 0.0  ;;  %v996_v48 = vpop.permute.xlu0 %995 }
  0xfb   : > { %v613_v45 = vmax.f32 %v603_v43, 0.0  ;;  %1487 = vmatprep.subr.bf16.mxu1 %v1486_v42  ;;  %v984_v43 = vld [vmem:[%s2000_s10 + $0x18] sm:$0xff] }
  0xfc   : > { %1489 = vmatpush3.bf16.msra.mxu1 %v1486_v42  ;;  %v983_v42 = vld [vmem:[%s2000_s10 + $0x10] sm:$0xff] }
  0xfd   : > { %v1490_v46 = vpack.c.bf16 %v614_v44, %v613_v45  ;;  %v985_v44 = vld [vmem:[%s2000_s10 + $0x20] sm:$0xff]  ;;  %v986_v45 = vld [vmem:[%s2000_s10 + $0x28] sm:$0xff] }
  0xff   : > { %1491 = vmatprep.subr.bf16.mxu1 %v1490_v46 }
 0x100   : > { %1493 = vmatpush3.bf16.msra.mxu1 %v1490_v46  ;;  %v1143_v46 = vld [vmem:[%s2002_s12] sm:$0xff] }
 0x103   : > { %1430 = vmatmul.mubr.msk.f32.vlgmr.msra.gmra.mrb[4].mxu1 %vm629_vm2, %v616_v47  ;;  %v1001_v47 = vpop.permute.xlu1 %1000 }
 0x104   : > { %1441 = vmatprep.mubr.msk.f32.mxu1 %vm857_vm4, %v815_v59 }
 0x1d6   : > { %v1431_v50 = vpop.f32.mrb[4].mxu1 }
 0x1d7   : > { %v708_v52 = vadd.f32 %v1431_v50, %v627_v49  ;;  %v702_v53 = vpop.f32.mrb[5].mxu1 }
 0x1d8   : > { %v703_v54 = vadd.f32 %v702_v53, %v622_v51 }
 0x1d9   : > { %v712_v55 = vmax.f32 %v708_v52, 0.0  ;;  %v1011_v52 = vpop.permute.xlu1 %1010 }
 0x1da   : > { %v711_v56 = vmax.f32 %v703_v54, 0.0  ;;  %v1006_v54 = vpop.permute.xlu0 %1005 }
 0x1dc   : > { %v1494_v57 = vpack.c.bf16 %v712_v55, %v711_v56 }
 0x1de   : > { %1495 = vmatprep.subr.bf16.mxu0 %v1494_v57 }
 0x1df   : > { %1497 = vmatpush3.bf16.msra.mxu0 %v1494_v57 }
 0x1e2   : > { %1437 = vmatmul.mubr.msk.f32.vlgmr.msra.gmra.mrb[0].mxu0 %vm727_vm3, %v714_v58 }
 0x1e3   : > { %1462 = vmatprep.mubr.msk.f32.mxu0 %vm1023_vm6, %v981_v13 }
 0x2b5   : > { %v1438_v61 = vpop.f32.mrb[0].mxu0 }
 0x2b6   : > { %v806_v63 = vadd.f32 %v1438_v61, %v725_v60  ;;  %v800_v0 = vpop.f32.mrb[1].mxu0 }
 0x2b7   : > { %v801_v1 = vadd.f32 %v800_v0, %v720_v62 }
 0x2b8   : > { %v810_v2 = vmul.f32 0.5, %v806_v63  ;;  %1246 = vst [vmem:[%s1876_s25 + $0x10] sm:$0x7] %v806_v63  ;;  %v1021_v63 = vpop.permute.xlu1 %1020 }
 0x2b9   : > { %1245 = vst [vmem:[%s1876_s25 + $0x8] sm:$0x7] %v801_v1 }
 0x2ba   : > { %v811_v3 = vmul.f32 1.442695, %v810_v2  ;;  %v1016_v2 = vpop.permute.xlu0 %1015 }
 0x2bc   : > { %1567 = vpow2.f32 %v811_v3 }
 0x2be   : > { %v1150_v13 = vpop.permute.xlu0 %1149 }
 0x2c6   : > { %v1568_v5 = vpop.eup %1567 }
 0x2c7   : > { %v813_v6 = vmul.f32 %v1568_v5, %v809_v4 }
 0x2c9   : > { %v814_v7 = vadd.f32 %v813_v6, %v801_v1 }
 0x2cb   : > { %1439 = vmatprep.subr.msk.mxu1 %vm876_vm5, %v814_v7 }
 0x2cc   : > { %1440 = vmatpush3.msk.msra.mxu1 %vm876_vm5, %v814_v7 }
 0x2cd   : > { %1442 = vmatmul.mubr.msk.f32.vlgmr.msra.gmra.mrb[6].mxu1 %vm857_vm4, %v816_v8 }
 0x2ce   : > { %1444 = vmatprep.mubr.msk.f32.mxu1 %vm857_vm4, %v817_v9 }
 0x2d1   : > { %1445 = vmatmul.mubr.msk.f32.gmra.mrb[8].mxu1 %vm857_vm4, %v818_v10  ;;  %v1144_v10 = vld [vmem:[%s2002_s12 + $0x8] sm:$0xff] }
 0x2d2   : > { %1447 = vmatprep.mubr.msk.f32.mxu1 %vm857_vm4, %v819_v11  ;;  %v1155_v11 = vpop.permute.xlu1 %1154 }
 0x2d5   : > { %1448 = vmatmul.mubr.msk.f32.gmra.mrb[10].mxu1 %vm857_vm4, %v820_v12 }
 0x2d6   : > { %1483 = vmatprep.mubr.msk.f32.mxu1 %vm1023_vm6, %v1143_v46 }
 0x3a0   : > { %v1443_v16 = vpop.f32.mrb[6].mxu1 }
 0x3a1   : > { %v952_v17 = vadd.f32 %v1443_v16, %v835_v14  ;;  %v946_v18 = vpop.f32.mrb[7].mxu1 }
 0x3a2   : > { %v947_v20 = vadd.f32 %v946_v18, %v830_v15 }
 0x3a3   : > { %v976_v22 = vmax.f32 %v952_v17, 0.0 }
 0x3a4   : > { %v975_v23 = vmax.f32 %v947_v20, 0.0  ;;  %v1446_v24 = vpop.f32.mrb[8].mxu1 }
 0x3a5   : > { %v962_v25 = vadd.f32 %v1446_v24, %v845_v19  ;;  %v956_v26 = vpop.f32.mrb[9].mxu1 }
 0x3a6   : > { %v1498_v27 = vpack.c.bf16 %v976_v22, %v975_v23  ;;  %v957_v28 = vadd.f32 %v956_v26, %v840_v21 }
 0x3a7   : > { %v978_v29 = vmax.f32 %v962_v25, 0.0 }
 0x3a8   : > { %v977_v31 = vmax.f32 %v957_v28, 0.0  ;;  %v1449_v32 = vpop.f32.mrb[10].mxu1  ;;  %1499 = vmatprep.subr.bf16.mxu0 %v1498_v27 }
 0x3a9   : > { %v972_v34 = vadd.f32 %v1449_v32, %v855_v30  ;;  %v966_v35 = vpop.f32.mrb[11].mxu1  ;;  %1501 = vmatpush3.bf16.msra.mxu0 %v1498_v27 }
 0x3aa   : > { %v1502_v36 = vpack.c.bf16 %v978_v29, %v977_v31  ;;  %v967_v37 = vadd.f32 %v966_v35, %v850_v33 }
 0x3ab   : > { %v980_v38 = vmax.f32 %v972_v34, 0.0 }
 0x3ac   : > { %v979_v39 = vmax.f32 %v967_v37, 0.0  ;;  %1503 = vmatprep.subr.bf16.mxu0 %v1502_v36 }
 0x3ad   : > { %1505 = vmatpush3.bf16.msra.mxu0 %v1502_v36 }
 0x3ae   : > { %v1506_v40 = vpack.c.bf16 %v980_v38, %v979_v39 }
 0x3b0   : > { %1507 = vmatprep.subr.bf16.mxu0 %v1506_v40 }
 0x3b1   : > { %1509 = vmatpush3.bf16.msra.mxu0 %v1506_v40 }
 0x3b4   : > { %1463 = vmatmul.mubr.msk.f32.vlgmr.msra.gmra.mrb[2].mxu0 %vm1023_vm6, %v982_v41 }
 0x3b5   : > { %1465 = vmatprep.mubr.msk.f32.mxu0 %vm1023_vm6, %v983_v42 }
 0x3b8   : > { %1466 = vmatmul.mubr.msk.f32.gmra.mrb[4].mxu0 %vm1023_vm6, %v984_v43 }
 0x3b9   : > { %1468 = vmatprep.mubr.msk.f32.mxu0 %vm1023_vm6, %v985_v44 }
 0x3bc   : > { %1469 = vmatmul.mubr.msk.f32.gmra.mrb[6].mxu0 %vm1023_vm6, %v986_v45 }
 0x487   : > { %v1464_v49 = vpop.f32.mrb[2].mxu0 }
 0x488   : > { %v1114_v50 = vadd.f32 %v1464_v49, %v1001_v47  ;;  %v1108_v51 = vpop.f32.mrb[3].mxu0 }
 0x489   : > { %v1109_v53 = vadd.f32 %v1108_v51, %v996_v48 }
 0x48a   : > { %v1138_v55 = vmax.f32 %v1114_v50, 0.0 }
 0x48b   : > { %v1137_v56 = vmax.f32 %v1109_v53, 0.0  ;;  %v1467_v57 = vpop.f32.mrb[4].mxu0 }
 0x48c   : > { %v1124_v58 = vadd.f32 %v1467_v57, %v1011_v52  ;;  %v1118_v59 = vpop.f32.mrb[5].mxu0 }
 0x48d   : > { %v1510_v60 = vpack.c.bf16 %v1138_v55, %v1137_v56  ;;  %v1119_v61 = vadd.f32 %v1118_v59, %v1006_v54 }
 0x48e   : > { %v1140_v62 = vmax.f32 %v1124_v58, 0.0 }
 0x48f   : > { %v1139_v0 = vmax.f32 %v1119_v61, 0.0  ;;  %v1470_v1 = vpop.f32.mrb[6].mxu0  ;;  %1511 = vmatprep.subr.bf16.mxu1 %v1510_v60 }
 0x490   : > { %v1134_v3 = vadd.f32 %v1470_v1, %v1021_v63  ;;  %v1128_v4 = vpop.f32.mrb[7].mxu0  ;;  %1513 = vmatpush3.bf16.msra.mxu1 %v1510_v60 }
 0x491   : > { %v1514_v5 = vpack.c.bf16 %v1140_v62, %v1139_v0  ;;  %v1129_v6 = vadd.f32 %v1128_v4, %v1016_v2 }
 0x492   : > { %v1142_v7 = vmax.f32 %v1134_v3, 0.0 }
 0x493   : > { %v1141_v8 = vmax.f32 %v1129_v6, 0.0  ;;  %1515 = vmatprep.subr.bf16.mxu1 %v1514_v5 }
 0x494   : > { %1517 = vmatpush3.bf16.msra.mxu1 %v1514_v5 }
 0x495   : > { %v1518_v9 = vpack.c.bf16 %v1142_v7, %v1141_v8 }
 0x497   : > { %1519 = vmatprep.subr.bf16.mxu1 %v1518_v9 }
 0x498   : > { %1521 = vmatpush3.bf16.msra.mxu1 %v1518_v9 }
 0x49b   : > { %1484 = vmatmul.mubr.msk.f32.vlgmr.msra.gmra.mrb[12].mxu1 %vm1023_vm6, %v1144_v10 }
 0x56e   : > { %v1485_v12 = vpop.f32.mrb[12].mxu1 }
 0x56f   : > { %v1235_v14 = vadd.f32 %v1485_v12, %v1155_v11  ;;  %v1229_v15 = vpop.f32.mrb[13].mxu1 }
 0x570   : > { %v1230_v16 = vadd.f32 %v1229_v15, %v1150_v13 }
 0x571   : > { %1247 = vst [vmem:[%s1876_s25 + $0x18] sm:$0x3f] %v1235_v14 }
 0x572   : > { %v1366_v17 = vmul.f32 -1.442695, %v1230_v16 }
 0x574   : > { %1569 = vpow2.f32 %v1366_v17 }
 0x57e   : > { %v1570_v18 = vpop.eup %1569 }
 0x57f   : > { %v1241_v19 = vadd.f32 1.0, %v1570_v18 }
 0x581   : > { %1571 = vrcp.f32 %v1241_v19 }
 0x58b   : > { %v1572_v20 = vpop.eup %1571 }
 0x58c   : > { %1244 = vst [vmem:[%s1876_s25] sm:$0x3f] %v1572_v20 }
 0x58d   : > { %1586 = shalt.err (!%p1583_p3)
}
 0x58e   : > { %s1587_s22 = scalar_lea.hbm %s1944_s19, 512  ;;  %s1591_s18 = scalar_lea.hbm %s2004_s14, 1024 }
 0x58f   : > { %p1588_p4 = scmp.ne.s32.totalorder %s1944_s19, %s1587_s22  ;;  %p1592_p9 = scmp.lt.u32.totalorder %s1944_s19, %s2004_s14 }
 0x590   : > { %p1593_p10 = scmp.lt.u32.totalorder %s1591_s18, %s1587_s22  ;;  %p1595_p12 = scmp.lt.u32.totalorder %s1587_s22, %s1944_s19 }
 0x591   : > { %p1589_p7 = pnand %p1588_p4, %p1755_p5 }
 0x592   : > { %p1594_p11 = por %p1593_p10, %p1592_p9 }
 0x593   : > { %p1590_p8 = pneg %p1589_p7 }
 0x594   : > { %p1596_p13 = por %p1595_p12, %p1594_p11 }
 0x596   : > { %p1597_p0 = pnand %p1596_p13, %p1590_p8 }
 0x598   : > { %1600 = shalt.err (!%p1597_p0)
}
 0x599   : > { %s1639_s15 = smov 128   ;;  %s1640_s29 = smov 256  }
 0x59a   : > { %s1641_s17 = smov 8  }
 0x59b   : > { %1522 = dma.vmem_to_hbm [thread:$0]  (%p1755_p5), %s1939_s21, 512, %s1944_s19, %s1949_s24, %s1639_s15, %s1640_s29, %s1641_s17  }
 0x59c PF: > { %s2019_s16 = sld [smem:[#allocation7_spill]]  ;;  %s2020_s27 = sld [smem:[#allocation5_spill]] }
 0x5a2   : > { %p1528_p1 = scmp.ge.s32.totalorder %s2019_s16, 2  ;;  %s1276_s28 = sand.u32 1, %s2020_s27  }
 0x5a3   : > { %s1277_s22 = scalar_lea.sflag [#allocation3], %s1276_s28 }
 0x5a4   : > { %p1525_p2 = pnand %p1528_p1, %p1759_p6 }
 0x5a6   : > { %1618 = dma.done.wait (!%p1525_p2), %s1277_s22, 512  }
 0x5a7   : > { %1620 = vsyncadd (!%p1525_p2), %s1277_s22, 4294966784  ;;  %s2022_s16 = sld [smem:[#allocation8_spill]]  ;;  %s2023_s18 = sld [smem:[#allocation6_spill]] }
 0x5a8   : > { %s2024_s15 = sld [smem:[#allocation9_spill]]  ;;  %s2025_s29 = smov %s1627_s30 }
 0x5ad   : > { %p24_p3 = scmp.ge.s32.totalorder %s2022_s16, 4   ;;  %s2026_s30 = smov %s2023_s18 }
 0x5af   :  { %26 = sbr.rel (!%p24_p3) target bundleno = 3 (0x3), region = 114 }
 0x5b6   :  { %1282 = vsyncpa [#allocation3], 1 }
 0x5b7   :  { %1284 = vsyncpa [#allocation3 + $0x1], 1 }

</bundles_post_ra>
